<compile_context>
chip_gen: v6e
topology: v6e:2x2x1
jax: 0.10.0
libtpu: 0.0.40
codegen_flags: <defaults>
</compile_context>

<pallas_src>
import math
import functools

import jax
import jax.numpy as jnp
from jax.experimental import pallas as pl
from jax.experimental.pallas import tpu as pltpu


# ----------------------------- host-side helpers -----------------------------

def positional_encoding(seq_len, d_model):
    pos = jnp.arange(seq_len, dtype=jnp.float32)[:, None]
    div = jnp.exp(jnp.arange(0, d_model, 2, dtype=jnp.float32)
                  * (-math.log(10000.0) / d_model))
    pe = jnp.zeros((seq_len, d_model), jnp.float32)
    pe = pe.at[:, 0::2].set(jnp.sin(pos * div))
    pe = pe.at[:, 1::2].set(jnp.cos(pos * div))
    return pe


def causal_mask(seq_len):
    r = jnp.arange(seq_len)
    return jnp.where(r[:, None] >= r[None, :], 0.0, -jnp.inf).astype(jnp.float32)


def init_params(key, features, model_size, ff_size, output):
    ks = jax.random.split(key, 16)
    u = lambda k, shape, s=0.1: jax.random.uniform(k, shape, jnp.float32, -s, s)
    D = model_size
    return dict(
        w_emb=u(ks[0], (D, features)), b_emb=u(ks[1], (D,)),
        wq=u(ks[2], (D, D)), wk=u(ks[3], (D, D)), wv=u(ks[4], (D, D)),
        bq=u(ks[5], (D,)), bk=u(ks[6], (D,)), bv=u(ks[7], (D,)),
        wo=u(ks[8], (D, D)), bo=u(ks[9], (D,)),
        g1=jnp.ones((D,), jnp.float32), be1=jnp.zeros((D,), jnp.float32),
        w1=u(ks[10], (ff_size, D)), b1=u(ks[11], (ff_size,)),
        w2=u(ks[12], (D, ff_size)), b2=u(ks[13], (D,)),
        # matches TransAm.init_weights(): decoder weight uniform(-0.1,0.1), bias zero
        wd=u(ks[14], (output, D)), bd=jnp.zeros((output,), jnp.float32),
        g2=jnp.ones((D,), jnp.float32), be2=jnp.zeros((D,), jnp.float32),
    )


def _layer_norm(x, gamma, beta, eps=1e-5):
    mean = jnp.mean(x, axis=-1, keepdims=True)
    var = jnp.mean((x - mean) ** 2, axis=-1, keepdims=True)
    return (x - mean) * jax.lax.rsqrt(var + eps) * gamma + beta


# rows of the packed `vecs` (9, D) parameter array
_BO, _G1, _BE1, _G2, _BE2, _B2, _WD, _BD, _WEMB = range(9)


# ------------------------------ Pallas kernel ------------------------------

def trans_am_kernel(src_ref, peb_ref, wqkv_ref, bqkv_ref, bff_ref, wo_ref,
                    w1_ref, w2_ref, vecs_ref, out_ref, *, num_heads):
    S, D = src_ref.shape          # one sequence per grid step
    Dh = D // num_heads

    vecs = vecs_ref[...]          # (9, D) packed vectors

    # 1) embedding (features == 1): src is pre-broadcast to (S, D), so this is
    #    a plain elementwise FMA with w_emb; peb already holds pe + embed bias.
    x = src_ref[...] * vecs[_WEMB:_WEMB + 1, :] + peb_ref[...]          # (S, D)

    # 2) fused Q/K/V projection: one (S,D) x (D,3D) matmul + lane-aligned bias.
    qkv = jnp.dot(x, wqkv_ref[...], preferred_element_type=jnp.float32) + bqkv_ref[...]
    q, k, v = qkv[:, 0:D], qkv[:, D:2 * D], qkv[:, 2 * D:3 * D]

    # causal mask for this sequence only (grid step == one sequence, so no
    # cross-batch masking is needed).
    row = jax.lax.broadcasted_iota(jnp.int32, (S, S), 0)
    col = jax.lax.broadcasted_iota(jnp.int32, (S, S), 1)
    valid = col <= row
    NEG = -1e30   # finite -> NaN-safe even if fully-masked (padded) rows appear

    scale = 1.0 / math.sqrt(Dh)
    attn = jnp.zeros((S, D), jnp.float32)
    for h in range(num_heads):    # static unroll; heads are tiny (Dh = 8)
        sl = slice(h * Dh, (h + 1) * Dh)
        qh, kh, vh = q[:, sl], k[:, sl], v[:, sl]
        # q @ k^T expressed as trans_b dot_general (no in-kernel transpose)
        s = jax.lax.dot_general(qh, kh, (((1,), (1,)), ((), ())),
                                preferred_element_type=jnp.float32)
        s = jnp.where(valid, s * scale, NEG)
        m = jnp.max(s, axis=-1, keepdims=True)
        p = jnp.exp(s - m)
        # approx reciprocal goes to the EUP slot (effectively free)
        p = p * pl.reciprocal(jnp.sum(p, axis=-1, keepdims=True), approx=True)
        head = jnp.dot(p, vh, preferred_element_type=jnp.float32)        # (S, Dh)
        # per-head output projection accumulation: no concat / lane relayout
        attn = attn + jnp.dot(head, wo_ref[sl, :],
                              preferred_element_type=jnp.float32)
    attn = attn + vecs[_BO:_BO + 1, :]

    # 3) residual + LayerNorm1 (post-norm)
    x = _layer_norm(x + attn, vecs[_G1:_G1 + 1, :], vecs[_BE1:_BE1 + 1, :])

    # 4) feed-forward (ReLU); weights pre-transposed by the wrapper
    h1 = jnp.dot(x, w1_ref[...], preferred_element_type=jnp.float32) + bff_ref[...]
    h1 = jnp.maximum(h1, 0.0)
    ff = jnp.dot(h1, w2_ref[...], preferred_element_type=jnp.float32) + vecs[_B2:_B2 + 1, :]

    # 5) residual + LayerNorm2
    x = _layer_norm(x + ff, vecs[_G2:_G2 + 1, :], vecs[_BE2:_BE2 + 1, :])

    # 6) decoder (output == 1): lane-dense (1, S) row via trans_b dot_general.
    out = jax.lax.dot_general(vecs[_WD:_WD + 1, :], x, (((1,), (1,)), ((), ())),
                              preferred_element_type=jnp.float32)
    out_ref[0] = out + vecs[_BD:_BD + 1, 0:1]


# ------------------------------ wrapper ------------------------------

def trans_am_forward(src, params, *, num_heads):
    B, S, F = src.shape
    assert F == 1, "kernel specializes the features=1 embedding as an elementwise FMA"
    D = params["w_emb"].shape[0]
    FF = params["w1"].shape[0]
    O = params["wd"].shape[0]
    assert O == 1, "kernel specializes the output=1 decoder"
    assert D % num_heads == 0

    # One-time parameter/constant repacking (pre-transposed weights, fused QKV,
    # pe + embed bias folded, lane-aligned bias rows, (D,) vectors packed).
    pe = positional_encoding(S, D)
    peb = pe + params["b_emb"][None, :]                                            # (S, D)
    # pre-broadcast src: identical DMA bytes after lane-tile padding, but the
    # kernel avoids the cross-lane splat of a (S,1)*(1,D) broadcast.
    src_b = jnp.broadcast_to(src.reshape(B * S, 1), (B * S, D))                    # (BS, D)
    wqkv_t = jnp.concatenate([params["wq"].T, params["wk"].T, params["wv"].T], 1)  # (D, 3D)
    b_qkv = jnp.concatenate([params["bq"], params["bk"], params["bv"]])[None, :]   # (1, 3D)
    b_ff = params["b1"][None, :]                                                   # (1, FF)
    wo_t = params["wo"].T                                                          # (D, D)
    w1_t = params["w1"].T                                                          # (D, FF)
    w2_t = params["w2"].T                                                          # (FF, D)
    vecs = jnp.stack([
        params["bo"], params["g1"], params["be1"], params["g2"], params["be2"],
        params["b2"], params["wd"][0], jnp.full((D,), params["bd"][0]),
        params["w_emb"][:, 0],
    ], axis=0)                                                                     # (9, D)

    ins = [src_b, peb, wqkv_t, b_qkv, b_ff, wo_t, w1_t, w2_t, vecs]

    # Per-sequence grid, marked "parallel": on v7x the B sequences are split
    # across the two TensorCores; on v5e/v6e it is a cheap serial loop with
    # BlockSpec double-buffering overlapping DMA and compute.
    in_specs = [
        pl.BlockSpec((S, D), lambda b: (b, 0)),        # one sequence per step
        pl.BlockSpec((S, D), lambda b: (0, 0)),        # pe+b_emb: same block every step
        pl.BlockSpec((D, 3 * D), lambda b: (0, 0)),
        pl.BlockSpec((1, 3 * D), lambda b: (0, 0)),
        pl.BlockSpec((1, FF), lambda b: (0, 0)),
        pl.BlockSpec((D, D), lambda b: (0, 0)),
        pl.BlockSpec((D, FF), lambda b: (0, 0)),
        pl.BlockSpec((FF, D), lambda b: (0, 0)),
        pl.BlockSpec((9, D), lambda b: (0, 0)),
    ]
    out_specs = pl.BlockSpec((1, 1, S), lambda b: (b, 0, 0))

    kernel = functools.partial(trans_am_kernel, num_heads=num_heads)
    out = pl.pallas_call(
        kernel,
        out_shape=jax.ShapeDtypeStruct((B, 1, S), jnp.float32),
        grid=(B,),
        in_specs=in_specs,
        out_specs=out_specs,
        compiler_params=pltpu.CompilerParams(dimension_semantics=("parallel",)),
    )(*ins)
    return out.reshape(B, S, O)


# ------------------------------ pure-JAX reference ------------------------------

def trans_am_reference(src, params, *, num_heads):
    B, S, F = src.shape
    D = params["w_emb"].shape[0]
    Dh = D // num_heads
    pe = positional_encoding(S, D)
    mask = causal_mask(S)

    x = src @ params["w_emb"].T + params["b_emb"] + pe[None]
    q = x @ params["wq"].T + params["bq"]
    k = x @ params["wk"].T + params["bk"]
    v = x @ params["wv"].T + params["bv"]
    qh = q.reshape(B, S, num_heads, Dh).transpose(0, 2, 1, 3)
    kh = k.reshape(B, S, num_heads, Dh).transpose(0, 2, 1, 3)
    vh = v.reshape(B, S, num_heads, Dh).transpose(0, 2, 1, 3)
    scores = jnp.einsum("bhqd,bhkd->bhqk", qh, kh) / math.sqrt(Dh) + mask
    p = jax.nn.softmax(scores, axis=-1)
    attn = jnp.einsum("bhqk,bhkd->bhqd", p, vh).transpose(0, 2, 1, 3).reshape(B, S, D)
    attn = attn @ params["wo"].T + params["bo"]
    x = _layer_norm(x + attn, params["g1"], params["be1"])
    hdn = jax.nn.relu(x @ params["w1"].T + params["b1"])
    ff = hdn @ params["w2"].T + params["b2"]
    x = _layer_norm(x + ff, params["g2"], params["be2"])
    return x @ params["wd"].T + params["bd"]


# ------------------------------ main ------------------------------

if __name__ == "__main__":
    B, S, FEATURES, D, HEADS, FF, OUT = 2, 8, 1, 32, 4, 64, 1

    key = jax.random.PRNGKey(0)
    k_src, k_par = jax.random.split(key)
    src = jax.random.normal(k_src, (B, S, FEATURES), jnp.float32)
    params = init_params(k_par, FEATURES, D, FF, OUT)

    out = trans_am_forward(src, params, num_heads=HEADS)
    out = jax.block_until_ready(out)

    ref = trans_am_reference(src, params, num_heads=HEADS)
    assert out.shape == (B, S, OUT)
    # approx=True softmax reciprocal (EUP vrcp) perturbs low bits; 1e-3 is far
    # above its error yet far below any structural-bug signal at these scales.
    assert jnp.allclose(out, ref, atol=1e-3, rtol=1e-3), "mismatch vs JAX reference"

    print("KERNEL_OK")
</pallas_src>

<mosaic_0001>
module attributes {stable_mosaic.version = 11 : i64} {
  func.func @trans_am_kernel(%arg0: i32, %arg1: memref<8x32xf32, #tpu.memory_space<vmem>>, %arg2: memref<8x32xf32, #tpu.memory_space<vmem>>, %arg3: memref<32x96xf32, #tpu.memory_space<vmem>>, %arg4: memref<1x96xf32, #tpu.memory_space<vmem>>, %arg5: memref<1x64xf32, #tpu.memory_space<vmem>>, %arg6: memref<32x32xf32, #tpu.memory_space<vmem>>, %arg7: memref<32x64xf32, #tpu.memory_space<vmem>>, %arg8: memref<64x32xf32, #tpu.memory_space<vmem>>, %arg9: memref<9x32xf32, #tpu.memory_space<vmem>>, %arg10: memref<1x1x8xf32, #tpu.memory_space<vmem>>) attributes {dimension_semantics = [#tpu.dimension_semantics<parallel>], iteration_bounds = array<i64: 2>, scalar_prefetch = 0 : i64, scratch_operands = 0 : i64, tpu.core_type = #tpu.core_type<tc>, window_params = [{transform_indices = @transform_0, window_bounds = array<i64: 8, 32>}, {pipeline_mode = #tpu.pipeline_mode<synchronous>, transform_indices = @transform_1, window_bounds = array<i64: 8, 32>}, {pipeline_mode = #tpu.pipeline_mode<synchronous>, transform_indices = @transform_2, window_bounds = array<i64: 32, 96>}, {pipeline_mode = #tpu.pipeline_mode<synchronous>, transform_indices = @transform_3, window_bounds = array<i64: 1, 96>}, {pipeline_mode = #tpu.pipeline_mode<synchronous>, transform_indices = @transform_4, window_bounds = array<i64: 1, 64>}, {pipeline_mode = #tpu.pipeline_mode<synchronous>, transform_indices = @transform_5, window_bounds = array<i64: 32, 32>}, {pipeline_mode = #tpu.pipeline_mode<synchronous>, transform_indices = @transform_6, window_bounds = array<i64: 32, 64>}, {pipeline_mode = #tpu.pipeline_mode<synchronous>, transform_indices = @transform_7, window_bounds = array<i64: 64, 32>}, {pipeline_mode = #tpu.pipeline_mode<synchronous>, transform_indices = @transform_8, window_bounds = array<i64: 9, 32>}, {transform_indices = @transform_9, window_bounds = array<i64: 1, 1, 8>}]} {
    %c0 = arith.constant 0 : index
    %c0_0 = arith.constant 0 : index
    %0 = vector.load %arg9[%c0, %c0_0] : memref<9x32xf32, #tpu.memory_space<vmem>>, vector<9x32xf32>
    %c0_1 = arith.constant 0 : index
    %c0_2 = arith.constant 0 : index
    %1 = vector.load %arg1[%c0_1, %c0_2] : memref<8x32xf32, #tpu.memory_space<vmem>>, vector<8x32xf32>
    %2 = vector.extract_strided_slice %0 {offsets = [8, 0], sizes = [1, 32], strides = [1, 1]} : vector<9x32xf32> to vector<1x32xf32>
    %3 = vector.broadcast %2 : vector<1x32xf32> to vector<8x32xf32>
    %4 = arith.mulf %1, %3 : vector<8x32xf32>
    %c0_3 = arith.constant 0 : index
    %c0_4 = arith.constant 0 : index
    %5 = vector.load %arg2[%c0_3, %c0_4] : memref<8x32xf32, #tpu.memory_space<vmem>>, vector<8x32xf32>
    %6 = arith.addf %4, %5 : vector<8x32xf32>
    %c0_5 = arith.constant 0 : index
    %c0_6 = arith.constant 0 : index
    %7 = vector.load %arg3[%c0_5, %c0_6] : memref<32x96xf32, #tpu.memory_space<vmem>>, vector<32x96xf32>
    %cst = arith.constant dense<0.000000e+00> : vector<8x96xf32>
    %8 = tpu.matmul %6, %7, %cst {dimension_numbers = #tpu.dot_dimension_numbers<[1], [0], [0], [1], [0, 0, 1, 1], [], []>} : vector<8x32xf32>, vector<32x96xf32>, vector<8x96xf32> -> vector<8x96xf32>
    %c0_7 = arith.constant 0 : index
    %c0_8 = arith.constant 0 : index
    %9 = vector.load %arg4[%c0_7, %c0_8] : memref<1x96xf32, #tpu.memory_space<vmem>>, vector<1x96xf32>
    %10 = vector.broadcast %9 : vector<1x96xf32> to vector<8x96xf32>
    %11 = arith.addf %8, %10 : vector<8x96xf32>
    %12 = vector.extract_strided_slice %11 {offsets = [0, 0], sizes = [8, 32], strides = [1, 1]} : vector<8x96xf32> to vector<8x32xf32>
    %13 = vector.extract_strided_slice %11 {offsets = [0, 32], sizes = [8, 32], strides = [1, 1]} : vector<8x96xf32> to vector<8x32xf32>
    %14 = vector.extract_strided_slice %11 {offsets = [0, 64], sizes = [8, 32], strides = [1, 1]} : vector<8x96xf32> to vector<8x32xf32>
    %15 = tpu.iota {dimensions = array<i32: 0>} : vector<8x8xi32>
    %16 = tpu.iota {dimensions = array<i32: 1>} : vector<8x8xi32>
    %17 = arith.cmpi sle, %16, %15 : vector<8x8xi32>
    %cst_9 = arith.constant 0.000000e+00 : f32
    %18 = vector.broadcast %cst_9 : f32 to vector<8x32xf32>
    %19 = vector.extract_strided_slice %12 {offsets = [0, 0], sizes = [8, 8], strides = [1, 1]} : vector<8x32xf32> to vector<8x8xf32>
    %20 = vector.extract_strided_slice %13 {offsets = [0, 0], sizes = [8, 8], strides = [1, 1]} : vector<8x32xf32> to vector<8x8xf32>
    %21 = vector.extract_strided_slice %14 {offsets = [0, 0], sizes = [8, 8], strides = [1, 1]} : vector<8x32xf32> to vector<8x8xf32>
    %cst_10 = arith.constant dense<0.000000e+00> : vector<8x8xf32>
    %22 = tpu.matmul %19, %20, %cst_10 {dimension_numbers = #tpu.dot_dimension_numbers<[1], [1], [0], [0], [0, 0, 1, 0], [], []>} : vector<8x8xf32>, vector<8x8xf32>, vector<8x8xf32> -> vector<8x8xf32>
    %cst_11 = arith.constant 0.353553385 : f32
    %23 = vector.broadcast %cst_11 : f32 to vector<8x8xf32>
    %24 = arith.mulf %22, %23 : vector<8x8xf32>
    %cst_12 = arith.constant -1.000000e+30 : f32
    %25 = vector.broadcast %cst_12 : f32 to vector<8x8xf32>
    %26 = arith.select %17, %24, %25 : vector<8x8xi1>, vector<8x8xf32>
    %cst_13 = arith.constant dense<0xFF800000> : vector<8xf32>
    %27 = vector.multi_reduction <maximumf>, %26, %cst_13 [1] : vector<8x8xf32> to vector<8xf32>
    %28 = vector.shape_cast %27 : vector<8xf32> to vector<8x1xf32>
    %29 = vector.broadcast %28 : vector<8x1xf32> to vector<8x8xf32>
    %30 = arith.subf %26, %29 : vector<8x8xf32>
    %31 = math.exp %30 : vector<8x8xf32>
    %cst_14 = arith.constant dense<0.000000e+00> : vector<8xf32>
    %32 = vector.multi_reduction <add>, %31, %cst_14 [1] : vector<8x8xf32> to vector<8xf32>
    %33 = vector.shape_cast %32 : vector<8xf32> to vector<8x1xf32>
    %34 = tpu.reciprocal %33 {approx = true} : vector<8x1xf32> -> vector<8x1xf32>
    %35 = vector.broadcast %34 : vector<8x1xf32> to vector<8x8xf32>
    %36 = arith.mulf %31, %35 : vector<8x8xf32>
    %cst_15 = arith.constant dense<0.000000e+00> : vector<8x8xf32>
    %37 = tpu.matmul %36, %21, %cst_15 {dimension_numbers = #tpu.dot_dimension_numbers<[1], [0], [0], [1], [0, 0, 1, 1], [], []>} : vector<8x8xf32>, vector<8x8xf32>, vector<8x8xf32> -> vector<8x8xf32>
    %c0_16 = arith.constant 0 : index
    %c0_17 = arith.constant 0 : index
    %38 = vector.load %arg6[%c0_16, %c0_17] : memref<32x32xf32, #tpu.memory_space<vmem>>, vector<8x32xf32>
    %cst_18 = arith.constant dense<0.000000e+00> : vector<8x32xf32>
    %39 = tpu.matmul %37, %38, %cst_18 {dimension_numbers = #tpu.dot_dimension_numbers<[1], [0], [0], [1], [0, 0, 1, 1], [], []>} : vector<8x8xf32>, vector<8x32xf32>, vector<8x32xf32> -> vector<8x32xf32>
    %40 = arith.addf %18, %39 : vector<8x32xf32>
    %41 = vector.extract_strided_slice %12 {offsets = [0, 8], sizes = [8, 8], strides = [1, 1]} : vector<8x32xf32> to vector<8x8xf32>
    %42 = vector.extract_strided_slice %13 {offsets = [0, 8], sizes = [8, 8], strides = [1, 1]} : vector<8x32xf32> to vector<8x8xf32>
    %43 = vector.extract_strided_slice %14 {offsets = [0, 8], sizes = [8, 8], strides = [1, 1]} : vector<8x32xf32> to vector<8x8xf32>
    %cst_19 = arith.constant dense<0.000000e+00> : vector<8x8xf32>
    %44 = tpu.matmul %41, %42, %cst_19 {dimension_numbers = #tpu.dot_dimension_numbers<[1], [1], [0], [0], [0, 0, 1, 0], [], []>} : vector<8x8xf32>, vector<8x8xf32>, vector<8x8xf32> -> vector<8x8xf32>
    %cst_20 = arith.constant 0.353553385 : f32
    %45 = vector.broadcast %cst_20 : f32 to vector<8x8xf32>
    %46 = arith.mulf %44, %45 : vector<8x8xf32>
    %cst_21 = arith.constant -1.000000e+30 : f32
    %47 = vector.broadcast %cst_21 : f32 to vector<8x8xf32>
    %48 = arith.select %17, %46, %47 : vector<8x8xi1>, vector<8x8xf32>
    %cst_22 = arith.constant dense<0xFF800000> : vector<8xf32>
    %49 = vector.multi_reduction <maximumf>, %48, %cst_22 [1] : vector<8x8xf32> to vector<8xf32>
    %50 = vector.shape_cast %49 : vector<8xf32> to vector<8x1xf32>
    %51 = vector.broadcast %50 : vector<8x1xf32> to vector<8x8xf32>
    %52 = arith.subf %48, %51 : vector<8x8xf32>
    %53 = math.exp %52 : vector<8x8xf32>
    %cst_23 = arith.constant dense<0.000000e+00> : vector<8xf32>
    %54 = vector.multi_reduction <add>, %53, %cst_23 [1] : vector<8x8xf32> to vector<8xf32>
    %55 = vector.shape_cast %54 : vector<8xf32> to vector<8x1xf32>
    %56 = tpu.reciprocal %55 {approx = true} : vector<8x1xf32> -> vector<8x1xf32>
    %57 = vector.broadcast %56 : vector<8x1xf32> to vector<8x8xf32>
    %58 = arith.mulf %53, %57 : vector<8x8xf32>
    %cst_24 = arith.constant dense<0.000000e+00> : vector<8x8xf32>
    %59 = tpu.matmul %58, %43, %cst_24 {dimension_numbers = #tpu.dot_dimension_numbers<[1], [0], [0], [1], [0, 0, 1, 1], [], []>} : vector<8x8xf32>, vector<8x8xf32>, vector<8x8xf32> -> vector<8x8xf32>
    %c8 = arith.constant 8 : index
    %c0_25 = arith.constant 0 : index
    %60 = vector.load %arg6[%c8, %c0_25] : memref<32x32xf32, #tpu.memory_space<vmem>>, vector<8x32xf32>
    %cst_26 = arith.constant dense<0.000000e+00> : vector<8x32xf32>
    %61 = tpu.matmul %59, %60, %cst_26 {dimension_numbers = #tpu.dot_dimension_numbers<[1], [0], [0], [1], [0, 0, 1, 1], [], []>} : vector<8x8xf32>, vector<8x32xf32>, vector<8x32xf32> -> vector<8x32xf32>
    %62 = arith.addf %40, %61 : vector<8x32xf32>
    %63 = vector.extract_strided_slice %12 {offsets = [0, 16], sizes = [8, 8], strides = [1, 1]} : vector<8x32xf32> to vector<8x8xf32>
    %64 = vector.extract_strided_slice %13 {offsets = [0, 16], sizes = [8, 8], strides = [1, 1]} : vector<8x32xf32> to vector<8x8xf32>
    %65 = vector.extract_strided_slice %14 {offsets = [0, 16], sizes = [8, 8], strides = [1, 1]} : vector<8x32xf32> to vector<8x8xf32>
    %cst_27 = arith.constant dense<0.000000e+00> : vector<8x8xf32>
    %66 = tpu.matmul %63, %64, %cst_27 {dimension_numbers = #tpu.dot_dimension_numbers<[1], [1], [0], [0], [0, 0, 1, 0], [], []>} : vector<8x8xf32>, vector<8x8xf32>, vector<8x8xf32> -> vector<8x8xf32>
    %cst_28 = arith.constant 0.353553385 : f32
    %67 = vector.broadcast %cst_28 : f32 to vector<8x8xf32>
    %68 = arith.mulf %66, %67 : vector<8x8xf32>
    %cst_29 = arith.constant -1.000000e+30 : f32
    %69 = vector.broadcast %cst_29 : f32 to vector<8x8xf32>
    %70 = arith.select %17, %68, %69 : vector<8x8xi1>, vector<8x8xf32>
    %cst_30 = arith.constant dense<0xFF800000> : vector<8xf32>
    %71 = vector.multi_reduction <maximumf>, %70, %cst_30 [1] : vector<8x8xf32> to vector<8xf32>
    %72 = vector.shape_cast %71 : vector<8xf32> to vector<8x1xf32>
    %73 = vector.broadcast %72 : vector<8x1xf32> to vector<8x8xf32>
    %74 = arith.subf %70, %73 : vector<8x8xf32>
    %75 = math.exp %74 : vector<8x8xf32>
    %cst_31 = arith.constant dense<0.000000e+00> : vector<8xf32>
    %76 = vector.multi_reduction <add>, %75, %cst_31 [1] : vector<8x8xf32> to vector<8xf32>
    %77 = vector.shape_cast %76 : vector<8xf32> to vector<8x1xf32>
    %78 = tpu.reciprocal %77 {approx = true} : vector<8x1xf32> -> vector<8x1xf32>
    %79 = vector.broadcast %78 : vector<8x1xf32> to vector<8x8xf32>
    %80 = arith.mulf %75, %79 : vector<8x8xf32>
    %cst_32 = arith.constant dense<0.000000e+00> : vector<8x8xf32>
    %81 = tpu.matmul %80, %65, %cst_32 {dimension_numbers = #tpu.dot_dimension_numbers<[1], [0], [0], [1], [0, 0, 1, 1], [], []>} : vector<8x8xf32>, vector<8x8xf32>, vector<8x8xf32> -> vector<8x8xf32>
    %c16 = arith.constant 16 : index
    %c0_33 = arith.constant 0 : index
    %82 = vector.load %arg6[%c16, %c0_33] : memref<32x32xf32, #tpu.memory_space<vmem>>, vector<8x32xf32>
    %cst_34 = arith.constant dense<0.000000e+00> : vector<8x32xf32>
    %83 = tpu.matmul %81, %82, %cst_34 {dimension_numbers = #tpu.dot_dimension_numbers<[1], [0], [0], [1], [0, 0, 1, 1], [], []>} : vector<8x8xf32>, vector<8x32xf32>, vector<8x32xf32> -> vector<8x32xf32>
    %84 = arith.addf %62, %83 : vector<8x32xf32>
    %85 = vector.extract_strided_slice %12 {offsets = [0, 24], sizes = [8, 8], strides = [1, 1]} : vector<8x32xf32> to vector<8x8xf32>
    %86 = vector.extract_strided_slice %13 {offsets = [0, 24], sizes = [8, 8], strides = [1, 1]} : vector<8x32xf32> to vector<8x8xf32>
    %87 = vector.extract_strided_slice %14 {offsets = [0, 24], sizes = [8, 8], strides = [1, 1]} : vector<8x32xf32> to vector<8x8xf32>
    %cst_35 = arith.constant dense<0.000000e+00> : vector<8x8xf32>
    %88 = tpu.matmul %85, %86, %cst_35 {dimension_numbers = #tpu.dot_dimension_numbers<[1], [1], [0], [0], [0, 0, 1, 0], [], []>} : vector<8x8xf32>, vector<8x8xf32>, vector<8x8xf32> -> vector<8x8xf32>
    %cst_36 = arith.constant 0.353553385 : f32
    %89 = vector.broadcast %cst_36 : f32 to vector<8x8xf32>
    %90 = arith.mulf %88, %89 : vector<8x8xf32>
    %cst_37 = arith.constant -1.000000e+30 : f32
    %91 = vector.broadcast %cst_37 : f32 to vector<8x8xf32>
    %92 = arith.select %17, %90, %91 : vector<8x8xi1>, vector<8x8xf32>
    %cst_38 = arith.constant dense<0xFF800000> : vector<8xf32>
    %93 = vector.multi_reduction <maximumf>, %92, %cst_38 [1] : vector<8x8xf32> to vector<8xf32>
    %94 = vector.shape_cast %93 : vector<8xf32> to vector<8x1xf32>
    %95 = vector.broadcast %94 : vector<8x1xf32> to vector<8x8xf32>
    %96 = arith.subf %92, %95 : vector<8x8xf32>
    %97 = math.exp %96 : vector<8x8xf32>
    %cst_39 = arith.constant dense<0.000000e+00> : vector<8xf32>
    %98 = vector.multi_reduction <add>, %97, %cst_39 [1] : vector<8x8xf32> to vector<8xf32>
    %99 = vector.shape_cast %98 : vector<8xf32> to vector<8x1xf32>
    %100 = tpu.reciprocal %99 {approx = true} : vector<8x1xf32> -> vector<8x1xf32>
    %101 = vector.broadcast %100 : vector<8x1xf32> to vector<8x8xf32>
    %102 = arith.mulf %97, %101 : vector<8x8xf32>
    %cst_40 = arith.constant dense<0.000000e+00> : vector<8x8xf32>
    %103 = tpu.matmul %102, %87, %cst_40 {dimension_numbers = #tpu.dot_dimension_numbers<[1], [0], [0], [1], [0, 0, 1, 1], [], []>} : vector<8x8xf32>, vector<8x8xf32>, vector<8x8xf32> -> vector<8x8xf32>
    %c24 = arith.constant 24 : index
    %c0_41 = arith.constant 0 : index
    %104 = vector.load %arg6[%c24, %c0_41] : memref<32x32xf32, #tpu.memory_space<vmem>>, vector<8x32xf32>
    %cst_42 = arith.constant dense<0.000000e+00> : vector<8x32xf32>
    %105 = tpu.matmul %103, %104, %cst_42 {dimension_numbers = #tpu.dot_dimension_numbers<[1], [0], [0], [1], [0, 0, 1, 1], [], []>} : vector<8x8xf32>, vector<8x32xf32>, vector<8x32xf32> -> vector<8x32xf32>
    %106 = arith.addf %84, %105 : vector<8x32xf32>
    %107 = vector.extract_strided_slice %0 {offsets = [0, 0], sizes = [1, 32], strides = [1, 1]} : vector<9x32xf32> to vector<1x32xf32>
    %108 = vector.broadcast %107 : vector<1x32xf32> to vector<8x32xf32>
    %109 = arith.addf %106, %108 : vector<8x32xf32>
    %110 = arith.addf %6, %109 : vector<8x32xf32>
    %111 = vector.extract_strided_slice %0 {offsets = [1, 0], sizes = [1, 32], strides = [1, 1]} : vector<9x32xf32> to vector<1x32xf32>
    %112 = vector.extract_strided_slice %0 {offsets = [2, 0], sizes = [1, 32], strides = [1, 1]} : vector<9x32xf32> to vector<1x32xf32>
    %cst_43 = arith.constant dense<0.000000e+00> : vector<8xf32>
    %113 = vector.multi_reduction <add>, %110, %cst_43 [1] : vector<8x32xf32> to vector<8xf32>
    %114 = vector.shape_cast %113 : vector<8xf32> to vector<8x1xf32>
    %cst_44 = arith.constant 3.200000e+01 : f32
    %115 = vector.broadcast %cst_44 : f32 to vector<8x1xf32>
    %116 = arith.divf %114, %115 : vector<8x1xf32>
    %117 = vector.broadcast %116 : vector<8x1xf32> to vector<8x32xf32>
    %118 = arith.subf %110, %117 : vector<8x32xf32>
    %119 = arith.mulf %118, %118 : vector<8x32xf32>
    %cst_45 = arith.constant dense<0.000000e+00> : vector<8xf32>
    %120 = vector.multi_reduction <add>, %119, %cst_45 [1] : vector<8x32xf32> to vector<8xf32>
    %121 = vector.shape_cast %120 : vector<8xf32> to vector<8x1xf32>
    %cst_46 = arith.constant 3.200000e+01 : f32
    %122 = vector.broadcast %cst_46 : f32 to vector<8x1xf32>
    %123 = arith.divf %121, %122 : vector<8x1xf32>
    %124 = vector.broadcast %116 : vector<8x1xf32> to vector<8x32xf32>
    %125 = arith.subf %110, %124 : vector<8x32xf32>
    %cst_47 = arith.constant 9.99999974E-6 : f32
    %126 = vector.broadcast %cst_47 : f32 to vector<8x1xf32>
    %127 = arith.addf %123, %126 : vector<8x1xf32>
    %128 = math.rsqrt %127 : vector<8x1xf32>
    %129 = vector.broadcast %128 : vector<8x1xf32> to vector<8x32xf32>
    %130 = arith.mulf %125, %129 : vector<8x32xf32>
    %131 = vector.broadcast %111 : vector<1x32xf32> to vector<8x32xf32>
    %132 = arith.mulf %130, %131 : vector<8x32xf32>
    %133 = vector.broadcast %112 : vector<1x32xf32> to vector<8x32xf32>
    %134 = arith.addf %132, %133 : vector<8x32xf32>
    %c0_48 = arith.constant 0 : index
    %c0_49 = arith.constant 0 : index
    %135 = vector.load %arg7[%c0_48, %c0_49] : memref<32x64xf32, #tpu.memory_space<vmem>>, vector<32x64xf32>
    %cst_50 = arith.constant dense<0.000000e+00> : vector<8x64xf32>
    %136 = tpu.matmul %134, %135, %cst_50 {dimension_numbers = #tpu.dot_dimension_numbers<[1], [0], [0], [1], [0, 0, 1, 1], [], []>} : vector<8x32xf32>, vector<32x64xf32>, vector<8x64xf32> -> vector<8x64xf32>
    %c0_51 = arith.constant 0 : index
    %c0_52 = arith.constant 0 : index
    %137 = vector.load %arg5[%c0_51, %c0_52] : memref<1x64xf32, #tpu.memory_space<vmem>>, vector<1x64xf32>
    %138 = vector.broadcast %137 : vector<1x64xf32> to vector<8x64xf32>
    %139 = arith.addf %136, %138 : vector<8x64xf32>
    %cst_53 = arith.constant 0.000000e+00 : f32
    %140 = vector.broadcast %cst_53 : f32 to vector<8x64xf32>
    %141 = arith.maximumf %139, %140 : vector<8x64xf32>
    %c0_54 = arith.constant 0 : index
    %c0_55 = arith.constant 0 : index
    %142 = vector.load %arg8[%c0_54, %c0_55] : memref<64x32xf32, #tpu.memory_space<vmem>>, vector<64x32xf32>
    %cst_56 = arith.constant dense<0.000000e+00> : vector<8x32xf32>
    %143 = tpu.matmul %141, %142, %cst_56 {dimension_numbers = #tpu.dot_dimension_numbers<[1], [0], [0], [1], [0, 0, 1, 1], [], []>} : vector<8x64xf32>, vector<64x32xf32>, vector<8x32xf32> -> vector<8x32xf32>
    %144 = vector.extract_strided_slice %0 {offsets = [5, 0], sizes = [1, 32], strides = [1, 1]} : vector<9x32xf32> to vector<1x32xf32>
    %145 = vector.broadcast %144 : vector<1x32xf32> to vector<8x32xf32>
    %146 = arith.addf %143, %145 : vector<8x32xf32>
    %147 = arith.addf %134, %146 : vector<8x32xf32>
    %148 = vector.extract_strided_slice %0 {offsets = [3, 0], sizes = [1, 32], strides = [1, 1]} : vector<9x32xf32> to vector<1x32xf32>
    %149 = vector.extract_strided_slice %0 {offsets = [4, 0], sizes = [1, 32], strides = [1, 1]} : vector<9x32xf32> to vector<1x32xf32>
    %cst_57 = arith.constant dense<0.000000e+00> : vector<8xf32>
    %150 = vector.multi_reduction <add>, %147, %cst_57 [1] : vector<8x32xf32> to vector<8xf32>
    %151 = vector.shape_cast %150 : vector<8xf32> to vector<8x1xf32>
    %cst_58 = arith.constant 3.200000e+01 : f32
    %152 = vector.broadcast %cst_58 : f32 to vector<8x1xf32>
    %153 = arith.divf %151, %152 : vector<8x1xf32>
    %154 = vector.broadcast %153 : vector<8x1xf32> to vector<8x32xf32>
    %155 = arith.subf %147, %154 : vector<8x32xf32>
    %156 = arith.mulf %155, %155 : vector<8x32xf32>
    %cst_59 = arith.constant dense<0.000000e+00> : vector<8xf32>
    %157 = vector.multi_reduction <add>, %156, %cst_59 [1] : vector<8x32xf32> to vector<8xf32>
    %158 = vector.shape_cast %157 : vector<8xf32> to vector<8x1xf32>
    %cst_60 = arith.constant 3.200000e+01 : f32
    %159 = vector.broadcast %cst_60 : f32 to vector<8x1xf32>
    %160 = arith.divf %158, %159 : vector<8x1xf32>
    %161 = vector.broadcast %153 : vector<8x1xf32> to vector<8x32xf32>
    %162 = arith.subf %147, %161 : vector<8x32xf32>
    %cst_61 = arith.constant 9.99999974E-6 : f32
    %163 = vector.broadcast %cst_61 : f32 to vector<8x1xf32>
    %164 = arith.addf %160, %163 : vector<8x1xf32>
    %165 = math.rsqrt %164 : vector<8x1xf32>
    %166 = vector.broadcast %165 : vector<8x1xf32> to vector<8x32xf32>
    %167 = arith.mulf %162, %166 : vector<8x32xf32>
    %168 = vector.broadcast %148 : vector<1x32xf32> to vector<8x32xf32>
    %169 = arith.mulf %167, %168 : vector<8x32xf32>
    %170 = vector.broadcast %149 : vector<1x32xf32> to vector<8x32xf32>
    %171 = arith.addf %169, %170 : vector<8x32xf32>
    %172 = vector.extract_strided_slice %0 {offsets = [6, 0], sizes = [1, 32], strides = [1, 1]} : vector<9x32xf32> to vector<1x32xf32>
    %cst_62 = arith.constant dense<0.000000e+00> : vector<1x8xf32>
    %173 = tpu.matmul %172, %171, %cst_62 {dimension_numbers = #tpu.dot_dimension_numbers<[1], [1], [0], [0], [0, 0, 1, 0], [], []>} : vector<1x32xf32>, vector<8x32xf32>, vector<1x8xf32> -> vector<1x8xf32>
    %174 = vector.extract_strided_slice %0 {offsets = [7, 0], sizes = [1, 1], strides = [1, 1]} : vector<9x32xf32> to vector<1x1xf32>
    %175 = vector.broadcast %174 : vector<1x1xf32> to vector<1x8xf32>
    %176 = arith.addf %173, %175 : vector<1x8xf32>
    %c0_63 = arith.constant 0 : index
    %c0_64 = arith.constant 0 : index
    %c0_65 = arith.constant 0 : index
    %177 = vector.load %arg10[%c0_63, %c0_64, %c0_65] : memref<1x1x8xf32, #tpu.memory_space<vmem>>, vector<1x1x8xf32>
    %178 = vector.shape_cast %177 : vector<1x1x8xf32> to vector<1x8xf32>
    %179 = vector.shape_cast %176 : vector<1x8xf32> to vector<1x1x8xf32>
    tpu.vector_store %arg10[%c0_63, %c0_64, %c0_65], %179 {strides = array<i32>} : memref<1x1x8xf32, #tpu.memory_space<vmem>>, vector<1x1x8xf32>,
    return
  }
  func.func @transform_0(%arg0: i32) -> (i32, i32) {
    %c0_i32 = arith.constant 0 : i32
    %c0_i32_0 = arith.constant 0 : i32
    return %arg0, %c0_i32 : i32, i32
  }
  func.func @transform_1(%arg0: i32) -> (i32, i32) {
    %c0_i32 = arith.constant 0 : i32
    %c0_i32_0 = arith.constant 0 : i32
    %c0_i32_1 = arith.constant 0 : i32
    return %c0_i32, %c0_i32_0 : i32, i32
  }
  func.func @transform_2(%arg0: i32) -> (i32, i32) {
    %c0_i32 = arith.constant 0 : i32
    %c0_i32_0 = arith.constant 0 : i32
    %c0_i32_1 = arith.constant 0 : i32
    return %c0_i32, %c0_i32_0 : i32, i32
  }
  func.func @transform_3(%arg0: i32) -> (i32, i32) {
    %c0_i32 = arith.constant 0 : i32
    %c0_i32_0 = arith.constant 0 : i32
    %c0_i32_1 = arith.constant 0 : i32
    return %c0_i32, %c0_i32_0 : i32, i32
  }
  func.func @transform_4(%arg0: i32) -> (i32, i32) {
    %c0_i32 = arith.constant 0 : i32
    %c0_i32_0 = arith.constant 0 : i32
    %c0_i32_1 = arith.constant 0 : i32
    return %c0_i32, %c0_i32_0 : i32, i32
  }
  func.func @transform_5(%arg0: i32) -> (i32, i32) {
    %c0_i32 = arith.constant 0 : i32
    %c0_i32_0 = arith.constant 0 : i32
    %c0_i32_1 = arith.constant 0 : i32
    return %c0_i32, %c0_i32_0 : i32, i32
  }
  func.func @transform_6(%arg0: i32) -> (i32, i32) {
    %c0_i32 = arith.constant 0 : i32
    %c0_i32_0 = arith.constant 0 : i32
    %c0_i32_1 = arith.constant 0 : i32
    return %c0_i32, %c0_i32_0 : i32, i32
  }
  func.func @transform_7(%arg0: i32) -> (i32, i32) {
    %c0_i32 = arith.constant 0 : i32
    %c0_i32_0 = arith.constant 0 : i32
    %c0_i32_1 = arith.constant 0 : i32
    return %c0_i32, %c0_i32_0 : i32, i32
  }
  func.func @transform_8(%arg0: i32) -> (i32, i32) {
    %c0_i32 = arith.constant 0 : i32
    %c0_i32_0 = arith.constant 0 : i32
    %c0_i32_1 = arith.constant 0 : i32
    return %c0_i32, %c0_i32_0 : i32, i32
  }
  func.func @transform_9(%arg0: i32) -> (i32, i32, i32) {
    %c0_i32 = arith.constant 0 : i32
    %c0_i32_0 = arith.constant 0 : i32
    %c0_i32_1 = arith.constant 0 : i32
    return %arg0, %c0_i32, %c0_i32_0 : i32, i32, i32
  }
}

</mosaic_0001>

<bundles_post_ra>
// kernel: tpu_custom_call.1
= control target key start
LH: loop header
LB: loop body
LE: loop exit
PB: predicated region body
PF: predicated region fallthrough
CT: control target
= control target key end

     0   :  { %s2747_s0 = inlined_call_operand.hbm [shape: f32[16,32], index: 0, kind: input, shape index: {}]   ;;  %s2748_s1 = inlined_call_operand.hbm [shape: f32[8,32], index: 1, kind: input, shape index: {}]   ;;  %s2749_s2 = inlined_call_operand.vmem [shape: f32[32,96], index: 2, kind: input, shape index: {}]   ;;  %s2750_s3 = inlined_call_operand.vmem [shape: f32[1,96], index: 3, kind: input, shape index: {}]   ;;  %s2751_s4 = inlined_call_operand.vmem [shape: f32[1,64], index: 4, kind: input, shape index: {}]   ;;  %s2752_s5 = inlined_call_operand.vmem [shape: f32[32,32], index: 5, kind: input, shape index: {}]   ;;  %s2753_s6 = inlined_call_operand.vmem [shape: f32[32,64], index: 6, kind: input, shape index: {}]   ;;  %s2754_s7 = inlined_call_operand.vmem [shape: f32[64,32], index: 7, kind: input, shape index: {}]   ;;  %s2755_s8 = inlined_call_operand.hbm [shape: f32[9,32], index: 8, kind: input, shape index: {}]   ;;  %s2756_s9 = inlined_call_operand.hbm [shape: f32[2,1,8], index: 9, kind: output, shape index: {}]  }
   0x1   :  { %2762 = sst [smem:[#allocation14_spill]] %s2748_s1 }
   0x2   :  { %2763 = sst [smem:[#allocation15_spill]] %s2755_s8 }
   0x3   :  { %14 = vsyncpa [#allocation3], 0 }
   0x4   :  { %16 = vsyncpa [#allocation3 + $0x1], 0 }
   0x5   :  { %17 = vsyncpa [#allocation6], 0 }
   0x6   :  { %18 = vsyncpa [#allocation4], 0 }
   0x7   :  { %20 = vsyncpa [#allocation4 + $0x1], 0  ;;  %s2361_s30 = smov 0   ;;  %s2363_s10 = smov 0  }
   0x8   :  { %s2365_s11 = smov 0   ;;  %s2367_s12 = smov 0  }
   0x9 LB: > { %2764 = sst [smem:[#allocation12_spill]] %s2285_s11  ;;  %s2382_s13 = sadd.s32 4294967295, %s2289_s12   ;;  %s2289_s12 = sphi %s2367_s12, %s2786_s12   ;;  %s2285_s11 = sphi %s2365_s11, %s2783_s11   ;;  %s2281_s10 = sphi %s2363_s10, %s2785_s10   ;;  %s2277_s30 = sphi %s2361_s30, %s2784_s30  }
   0xa   : > { %s1847_s14 = sadd.s32 4294967294, %s2289_s12   ;;  %p46_p0 = scmp.ne.s32.totalorder %s2281_s10, %s2277_s30 }
   0xb   : > { %p2757_p1 = scmp.eq.s32.totalorder %s2382_s13, 0  ;;  %p244_p3 = scmp.eq.s32.totalorder %s1847_s14, 1 }
   0xc   : > { %p1848_p5 = scmp.ge.s32.totalorder %s2289_s12, 1  ;;  %p251_p7 = scmp.lt.s32.totalorder %s2289_s12, 3 }
   0xd   : > { %p2391_p4 = por %p2757_p1, %p46_p0  ;;  %p2396_p6 = por %p244_p3, %p46_p0 }
   0xe   : > { %p2401_p8 = pnand %p1848_p5, %p251_p7  ;;  %s2291_s18 = smov [#allocation5]  }
   0xf   : > { %s2765_s15 = scalar_select %p2391_p4, 1, 0 }
  0x10   : > { %s2766_s16 = scalar_select %p2396_p6, 1, 0 }
  0x11   : > { %s2767_s17 = scalar_select %p2401_p8, 1, 0 }
  0x12   : > { %s264_s19 = sshll.u32 %s2291_s18, 4  ;;  %p2048_p10 = pneg %p2401_p8  ;;  %s265_s19 = int_to_ptr.vmem [resolvable:$true] %s264_s19 }
  0x13   : > { %s2292_s20 = smov [#allocation7]   ;;  %s2152_s23 = scalar_lea.vmem %s265_s19, 128 }
  0x14   : > { %s292_s21 = sshll.u32 %s2292_s20, 4  ;;  %p2410_p11 = pnand %p2048_p10, %p2757_p1  ;;  %s293_s21 = int_to_ptr.vmem [resolvable:$true] %s292_s21 }
  0x15   : > { %p2153_p13 = scmp.ne.s32.totalorder %s265_s19, %s2152_s23  ;;  %p2160_p5 = scmp.lt.s32.totalorder %s265_s19, %s265_s19 }
  0x16   : > { %p2143_p12 = pneg %p2410_p11  ;;  %p2161_p7 = scmp.lt.s32.totalorder %s2152_s23, %s2152_s23 }
  0x18   : > { %p2155_p0 = pnand %p2153_p13, %p2143_p12  ;;  %p2162_p9 = por %p2161_p7, %p2160_p5 }
  0x1a   : > { %p2156_p3 = pneg %p2155_p0 }
  0x1c   : > { %p2163_p2 = pnand %p2162_p9, %p2156_p3 }
  0x1e   : > { %2166 = shalt.err (!%p2163_p2)
}
  0x1f   : > { %s2769_s1 = sld [smem:[#allocation14_spill]]  ;;  %s2178_s26 = scalar_lea.vmem %s293_s21, 256 }
  0x20   : > { %p2179_p10 = scmp.ne.s32.totalorder %s293_s21, %s2178_s26  ;;  %p2186_p13 = scmp.lt.s32.totalorder %s293_s21, %s293_s21 }
  0x21   : > { %p2187_p0 = scmp.lt.s32.totalorder %s2178_s26, %s2178_s26 }
  0x22   : > { %p2181_p1 = pnand %p2179_p10, %p2143_p12 }
  0x23   : > { %p2188_p4 = por %p2187_p0, %p2186_p13 }
  0x24   : > { %p2182_p6 = pneg %p2181_p1 }
  0x25   : > { %2051 = dma.hbm_to_vmem [thread:$0]  (!%p2410_p11), %s2769_s1, 128, %s265_s19, [#allocation6]  }
  0x26   : > { %p2189_p8 = pnand %p2188_p4, %p2182_p6 }
  0x28   : > { %2192 = shalt.err (!%p2189_p8)
}
  0x29   : > { %s2293_s27 = smov 128   ;;  %s2294_s28 = smov 8  }
  0x2a   : > { %s2770_s8 = sld [smem:[#allocation15_spill]]  ;;  %s2433_s18 = sadd.s32 1, %s2289_s12  }
  0x2b   : > { %s33_s19 = sadd.s32 1, %s2285_s11  ;;  %s30_s20 = ssub.s32 %s2289_s12, %s2433_s18 }
  0x2c   : > { %p40_p1 = scmp.ne.s32.totalorder %s2285_s11, %s2281_s10  ;;  %p31_p2 = scmp.eq.s32.totalorder %s30_s20, 0 }
  0x2d   : > { %p41_p4 = scmp.eq.s32.totalorder %s2289_s12, 0  ;;  %p2771_p6 = scmp.eq.s32.totalorder %s2382_s13, 1 }
  0x2e   : > { %p2065_p9 = scmp.lt.s32.totalorder %s2289_s12, 2  ;;  %s306_s22 = sand.u32 1, %s2285_s11  }
  0x2f   : > { %p2443_p8 = por %p2771_p6, %p40_p1  ;;  %p42_p12 = por %p41_p4, %p40_p1 }
  0x30   : > { %2054 = dma.hbm_to_vmem [thread:$0]  (!%p2410_p11), %s2770_s8, 256, %s293_s21, [#allocation6], %s2293_s27, %s2293_s27, %s2294_s28  }
  0x31   : > { %s2772_s23 = scalar_select %p2443_p8, 1, 0 }
  0x32   : > { %s2449_s24 = scalar_select %p31_p2, %s2285_s11, %s33_s19  }
  0x33   : > { %s1852_s25 = sshll.u32 %s306_s22, 3  ;;  %s1853_s21 = sshll.u32 %s2289_s12, 7 }
  0x34   : > { %2773 = sst [smem:[#allocation13_spill]] %s2449_s24  ;;  %s2456_s28 = scalar_lea.hbm %s2747_s0, %s1853_s21 }
  0x35   : > { %s310_s29 = scalar_lea.vmem [#allocation2], %s1852_s25  ;;  %p2458_p11 = pnand %p2065_p9, %p42_p12 }
  0x36   : > { %s317_s14 = sshll.u32 %s310_s29, 4  ;;  %s307_s19 = scalar_lea.sflag [#allocation3], %s306_s22  ;;  %s318_s14 = int_to_ptr.vmem [resolvable:$true] %s317_s14 }
  0x37   : > { %s2193_s1 = scalar_lea.hbm %s2456_s28, 128  ;;  %p2195_p5 = pneg %p2458_p11 }
  0x38   : > { %p2194_p3 = scmp.ne.s32.totalorder %s2456_s28, %s2193_s1  ;;  %s2198_s27 = scalar_lea.hbm %s2747_s0, 256 }
  0x39   : > { %p2199_p13 = scmp.lt.s32.totalorder %s2456_s28, %s2747_s0  ;;  %p2200_p0 = scmp.lt.s32.totalorder %s2198_s27, %s2193_s1 }
  0x3a   : > { %p2196_p7 = pnand %p2195_p5, %p2194_p3 }
  0x3b   : > { %p2201_p1 = por %p2200_p0, %p2199_p13 }
  0x3c   : > { %p2197_p10 = pneg %p2196_p7 }
  0x3e   : > { %p2202_p2 = pnand %p2201_p1, %p2197_p10 }
  0x40   : > { %2205 = shalt.err (!%p2202_p2)
}
  0x41   : > { %s2206_s29 = scalar_lea.vmem %s318_s14, 128  ;;  %s2295_s22 = smov [#allocation2]  }
  0x42   : > { %p2207_p4 = scmp.ne.s32.totalorder %s318_s14, %s2206_s29  ;;  %s2211_s24 = sshll.u32 %s2295_s22, 4  ;;  %s2212_s24 = int_to_ptr.vmem [resolvable:$false] %s2211_s24 }
  0x43   : > { %s2213_s11 = scalar_lea.vmem %s2212_s24, 256  ;;  %p2214_p12 = scmp.lt.s32.totalorder %s318_s14, %s2212_s24 }
  0x44   : > { %p2209_p6 = pnand %p2207_p4, %p2195_p5  ;;  %p2215_p3 = scmp.lt.s32.totalorder %s2213_s11, %s2206_s29 }
  0x46   : > { %p2210_p9 = pneg %p2209_p6  ;;  %p2216_p7 = por %p2215_p3, %p2214_p12 }
  0x48   : > { %p2217_p8 = pnand %p2216_p7, %p2210_p9 }
  0x4a   : > { %2220 = shalt.err (!%p2217_p8)
}
  0x4b   : > { %2058 = dma.hbm_to_vmem [thread:$0]  (!%p2458_p11), %s2456_s28, 128, %s318_s14, %s307_s19  }
  0x4c   : > { %p2775_p10 = scmp.ne.s32.totalorder %s2767_s17, 0 }
  0x4d   : > { %s2479_s1 = sand.u32 (!%p2775_p10), 1, %s2281_s10   ;;  %p2776_p5 = scmp.ne.s32.totalorder (!%p2775_p10), %s2765_s15, 0 }
  0x4e   : > { %326 = sbr.rel (%p2775_p10) target bundleno = 3752 (0xea8), region = 56  ;;  %s1855_s8 = sshll.u32 (!%p2775_p10), %s2479_s1, 3 }
  0x4f   : > { %s329_s21 = scalar_lea.sflag (!%p2775_p10), [#allocation3], %s2479_s1  ;;  %s332_s24 = scalar_lea.vmem (!%p2775_p10), [#allocation2], %s1855_s8 }
  0x53   : > { %2264 = dma.done.wait (%p2776_p5), %s329_s21, 128  }
  0x54   : > { %2266 = vsyncadd (%p2776_p5), %s329_s21, 4294967168  ;;  %p2777_p8 = scmp.eq.s32.totalorder %s2382_s13, 0 }
  0x56   : > { %2268 = dma.done.wait (%p2777_p8), [#allocation6], 384   ;;  %p2778_p11 = pmov %p2777_p8 }
  0x57   : > { %v2296_v0 = vmov 0.0   ;;  %vm2297_vm0 = vmmov 0   ;;  %v387_v1 = vld [vmem:[%s2749_s2 + $0x18] sm:$0xff]  ;;  %v386_v2 = vld [vmem:[%s2749_s2 + $0x10] sm:$0xff]  ;;  %v1858_v3 = vld [vmem:[#allocation7 + $0x8] ss:$0 sm:$0xff]  ;;  %v469_v17 = vlaneseq }
  0x58   : > { %2270 = vsyncadd (%p2778_p11), [#allocation6], 4294966912  ;;  %1930 = vmatprep.subr.mxu0 %v2296_v0  ;;  %1938 = vmatprep.mubr.msk.f32.mxu0 %vm2297_vm0, %v2296_v0  ;;  %v376_v4 = vld [vmem:[%s332_s24] sm:$0xff]  ;;  %v382_v7 = vld [vmem:[#allocation5] sm:$0xff]  ;;  %vm395_vm1 = vcmask 261120   ;;  %s2298_s29 = smov 120  }
  0x59   : > { %1941 = vmatprep.subr.mxu1 %v2296_v0  ;;  %1943 = vmatprep.mubr.msk.f32.mxu1 %vm2297_vm0, %v2296_v0  ;;  %v385_v5 = vld [vmem:[%s2749_s2 + $0x8] sm:$0xff]  ;;  %v381_v6 = vmul.f32 %v1858_v3, %v376_v4  ;;  %v384_v8 = vld [vmem:[%s2749_s2] sm:$0xff]  ;;  %s2299_s22 = smov 96   ;;  %s2300_s8 = smov 88   ;;  %vm477_vm2 = vcmask 64512   ;;  %v2538_v18 = vshrl.u32 %v469_v17, 7 }
  0x5a   : > { %1931 = vmatpush3.msra.mxu0 %v387_v1  ;;  %v1859_v10 = vld [vmem:[%s2750_s3] ss:$0 sm:$0xff]  ;;  %v2540_v19 = vand.u32 127, %v469_v17  ;;  %s2301_s21 = smov 56   ;;  %s2302_s24 = smov 64   ;;  %v809_v49 = vld [vmem:[%s2752_s5 + $0x8] sm:$0xff] }
  0x5b   : > { %1932 = vmatprep.subr.mxu0 %v2296_v0  ;;  %v2511_v9 = vadd.f32 %v382_v7, %v381_v6  ;;  %s2303_s11 = smov 80   ;;  %s2304_s15 = smov 112   ;;  %v641_v48 = vld [vmem:[%s2752_s5] sm:$0xff]  ;;  %vm1567_vm4 = vcmask 523264   ;;  %vm1747_vm5 = vcmask 57344  }
  0x5c   : > { %1933 = vmatpush3.msra.mxu0 %v386_v2  ;;  %vm473_vm3 = vcmp.le.s32.totalorder %v2540_v19, %v2538_v18  ;;  %s2305_s19 = smov 72   ;;  %s2306_s26 = smov 104   ;;  %v1365_v19 = vld [vmem:[%s2752_s5 + $0x18] sm:$0xff] }
  0x5d   : > { %1934 = vmatprep.subr.mxu0 %v2296_v0  ;;  %s2307_s27 = smov 48   ;;  %p2779_p0 = scmp.ne.s32.totalorder %s2772_s23, 0 }
  0x5e   : > { %1935 = vmatpush3.msra.mxu0 %v385_v5 }
  0x5f   : > { %1936 = vmatprep.subr.mxu0 %v2296_v0 }
  0x60   : > { %1937 = vmatpush3.msra.mxu0 %v384_v8 }
  0x61   : > { %1939 = vmatmul.mubr.msk.f32.vlgmr.msra.gmra.mxu0 %vm395_vm1, %v2511_v9  ;;  %1951 = vmatprep.subr.mxu0 %v2296_v0 }
  0x62   : > { %1953 = vmatprep.mubr.msk.f32.mxu0 %vm2297_vm0, %v2296_v0 }
 0x121   : > { %v465_v11 = vpop.f32.mrf.mxu0 }
 0x122   : > { %v2522_v12 = vadd.f32 %v1859_v10, %v465_v11 }
 0x123   : > { %v1940_v13 = vpop.f32.mrf.mxu0 }
 0x124   : > { %642 = vrot.lane.b32.xlu1 %v2522_v12, %s2298_s29  ;;  %475 = vrot.lane.b32.xlu0 %v2522_v12, %s2299_s22  ;;  %s2308_s22 = smov 40   ;;  %s1882_s29 = sshll.u32 %s2382_s13, 4 }
 0x125   : > { %s2310_s13 = smov [#allocation8]  }
 0x126   : > { %s2225_s28 = sshll.u32 %s2310_s13, 4  ;;  %s2226_s28 = int_to_ptr.vmem [resolvable:$false] %s2225_s28 }
 0x127   : > { %s2227_s14 = scalar_lea.vmem %s2226_s28, 32 }
 0x128   : > { %644 = vrot.lane.b32.xlu0 %v2522_v12, %s2300_s8 }
 0x196   : > { %v476_v14 = vpop.permute.xlu0 %475  ;;  %v643_v16 = vpop.permute.xlu1 %642 }
 0x197   : > { %1942 = vmatpush3.xpose.msk.msra.mxu1 %vm477_vm2, %v476_v14 }
 0x198   : > { %1946 = vmatprep.subr.mxu1 %v2296_v0 }
 0x19a   : > { %1944 = vmatmul.mubr.msk.f32.vlgmr.msra.gmra.mxu1 %vm477_vm2, %v2522_v12  ;;  %v645_v15 = vpop.permute.xlu0 %644 }
 0x19b   : > { %1952 = vmatpush3.xpose.msk.msra.mxu0 %vm477_vm2, %v645_v15  ;;  %1948 = vmatprep.mubr.msk.f32.mxu1 %vm2297_vm0, %v2296_v0 }
 0x19c   : > { %1961 = vmatprep.subr.mxu0 %v2296_v0 }
 0x19e   : > { %1954 = vmatmul.mubr.msk.f32.vlgmr.msra.gmra.mxu0 %vm477_vm2, %v643_v16  ;;  %v1123_v16 = vld [vmem:[%s2752_s5 + $0x10] sm:$0xff] }
 0x19f   : > { %1963 = vmatprep.mubr.msk.f32.mxu0 %vm2297_vm0, %v2296_v0  ;;  %1962 = vmatpush3.msra.mxu0 %v809_v49 }
 0x1a0   : > { %1971 = vmatprep.subr.mxu0 %v2296_v0 }
 0x25a   : > { %v548_v20 = vpop.f32.mrf.mxu1 }
 0x25b   : > { %v552_v21 = vmul.f32 0.35355338, %v548_v20 }
 0x25c   : > { %v1945_v22 = vpop.f32.mrf.mxu1 }
 0x25d   : > { %v553_v23 = vsel %vm473_vm3, %v552_v21, -1e+30 }
 0x25e   : > { %v716_v24 = vpop.f32.mrf.mxu0  ;;  %v554_v25 = vsel %vm477_vm2, %v553_v23, -inf }
 0x25f   : > { %v720_v26 = vmul.f32 0.35355338, %v716_v24  ;;  %555 = vmax.xlane.f32.xlu1 %v554_v25 }
 0x260   : > { %v1955_v27 = vpop.f32.mrf.mxu0 }
 0x261   : > { %v721_v28 = vsel %vm473_vm3, %v720_v26, -1e+30 }
 0x262   : > { %v722_v29 = vsel %vm477_vm2, %v721_v28, -inf }
 0x263   : > { %723 = vmax.xlane.f32.xlu0 %v722_v29 }
 0x2e8   : > { %v556_v30 = vpop.xlane.xlu1 %555 }
 0x2e9   : > { %v557_v31 = vsub.f32 %v553_v23, %v556_v30 }
 0x2eb   : > { %v558_v32 = vmul.f32 1.442695, %v557_v31 }
 0x2ec   : > { %v724_v33 = vpop.xlane.xlu0 %723 }
 0x2ed   : > { %2121 = vpow2.f32 %v558_v32  ;;  %v725_v34 = vsub.f32 %v721_v28, %v724_v33 }
 0x2ef   : > { %v726_v35 = vmul.f32 1.442695, %v725_v34 }
 0x2f1   : > { %2123 = vpow2.f32 %v726_v35 }
 0x2fa   : > { %v2122_v36 = vpop.eup %2121 }
 0x2fb   : > { %v560_v37 = vsel %vm477_vm2, %v2122_v36, 0.0 }
 0x2fc   : > { %561 = vadd.xlane.f32.xlu0 %v560_v37 }
 0x2fe   : > { %v2124_v38 = vpop.eup %2123 }
 0x2ff   : > { %v728_v39 = vsel %vm477_vm2, %v2124_v38, 0.0 }
 0x300   : > { %729 = vadd.xlane.f32.xlu1 %v728_v39  ;;  %v1442_v39 = vsub.s32 0, %v2538_v18 }
 0x311   : > { %733 = vrot.lane.b32.xlu1 %v2522_v12, %s2301_s21 }
 0x312   : > { %565 = vrot.lane.b32.xlu0 %v2522_v12, %s2302_s24 }
 0x315   : > { %958 = vrot.lane.b32.xlu1 %v2522_v12, %s2303_s11  ;;  %s2710_s11 = scalar_lea.hbm %s2756_s9, %s1882_s29 }
 0x316   : > { %956 = vrot.lane.b32.xlu0 %v2522_v12, %s2304_s15  ;;  %s1750_s15 = scalar_lea.sflag [#allocation4], %s2479_s1 }
 0x385   : > { %v562_v40 = vpop.xlane.xlu0 %561 }
 0x386   : > { %2125 = vrcp.f32 %v562_v40  ;;  %v2630_v40 = vld [vmem:[#allocation7] sm:$0xff] }
 0x389   : > { %v730_v41 = vpop.xlane.xlu1 %729  ;;  %v566_v42 = vpop.permute.xlu0 %565 }
 0x38a   : > { %2127 = vrcp.f32 %v730_v41  ;;  %1947 = vmatpush3.msra.mxu1 %v566_v42  ;;  %v1443_v41 = vrot.slane %v2630_v40, %v1442_v39 }
 0x38b   : > { %1956 = vmatprep.subr.mxu1 %v2296_v0 }
 0x38d   : > { %v734_v45 = vpop.permute.xlu1 %733  ;;  %v957_v55 = vpop.permute.xlu0 %956 }
 0x391   : > { %v959_v53 = vpop.permute.xlu1 %958 }
 0x393   : > { %v2126_v43 = vpop.eup %2125 }
 0x394   : > { %v564_v44 = vmul.f32 %v2126_v43, %v2122_v36 }
 0x396   : > { %1949 = vmatmul.mubr.msk.f32.vlgmr.msra.gmra.mxu1 %vm477_vm2, %v564_v44 }
 0x397   : > { %v2128_v46 = vpop.eup %2127  ;;  %1957 = vmatpush3.msra.mxu1 %v734_v45  ;;  %1958 = vmatprep.mubr.msk.f32.mxu1 %vm2297_vm0, %v2296_v0 }
 0x398   : > { %v732_v47 = vmul.f32 %v2128_v46, %v2124_v38  ;;  %1966 = vmatprep.subr.mxu1 %v2296_v0 }
 0x39a   : > { %1959 = vmatmul.mubr.msk.f32.vlgmr.msra.gmra.mxu1 %vm477_vm2, %v732_v47 }
 0x39b   : > { %1968 = vmatprep.mubr.msk.f32.mxu1 %vm2297_vm0, %v2296_v0  ;;  %1967 = vmatpush3.msra.mxu1 %v641_v48 }
 0x39c   : > { %1976 = vmatprep.subr.mxu1 %v2296_v0 }
 0x456   : > { %v637_v50 = vpop.f32.mrf.mxu1 }
 0x457   : > { %1969 = vmatmul.mubr.msk.f32.vlgmr.msra.gmra.mxu1 %vm477_vm2, %v637_v50 }
 0x458   : > { %v1950_v51 = vpop.f32.mrf.mxu1  ;;  %1978 = vmatprep.mubr.msk.f32.mxu1 %vm2297_vm0, %v2296_v0 }
 0x45a   : > { %v805_v52 = vpop.f32.mrf.mxu1 }
 0x45b   : > { %1964 = vmatmul.mubr.msk.f32.vlgmr.msra.gmra.mxu0 %vm477_vm2, %v805_v52 }
 0x45c   : > { %1972 = vmatpush3.xpose.msk.msra.mxu0 %vm477_vm2, %v959_v53  ;;  %v1960_v54 = vpop.f32.mrf.mxu1  ;;  %1973 = vmatprep.mubr.msk.f32.mxu0 %vm2297_vm0, %v2296_v0  ;;  %v1473_v53 = vld [vmem:[%s2753_s6 + $0x18] sm:$0xff] }
 0x45d   : > { %1981 = vmatprep.subr.mxu0 %v2296_v0  ;;  %v1472_v54 = vld [vmem:[%s2753_s6 + $0x10] sm:$0xff] }
 0x45f   : > { %1974 = vmatmul.mubr.msk.f32.vlgmr.msra.gmra.mxu0 %vm477_vm2, %v957_v55  ;;  %v1470_v55 = vld [vmem:[%s2753_s6] sm:$0xff] }
 0x460   : > { %1983 = vmatprep.mubr.msk.f32.mxu0 %vm2297_vm0, %v2296_v0  ;;  %1982 = vmatpush3.msra.mxu0 %v1123_v16 }
 0x461   : > { %1991 = vmatprep.subr.mxu0 %v2296_v0 }
 0x517   : > { %v952_v56 = vpop.f32.mrf.mxu1 }
 0x519   : > { %v1970_v57 = vpop.f32.mrf.mxu1 }
 0x51a   : > { %v1561_v57 = vld [vmem:[%s2754_s7 + $0x30] sm:$0xff] }
 0x51b   : > { %v879_v58 = vpop.f32.mrf.mxu0 }
 0x51c   : > { %v2585_v59 = vadd.f32 %v952_v56, %v879_v58  ;;  %v1562_v56 = vld [vmem:[%s2754_s7 + $0x38] sm:$0xff]  ;;  %v1560_v58 = vld [vmem:[%s2754_s7 + $0x28] sm:$0xff] }
 0x51d   : > { %v1965_v60 = vpop.f32.mrf.mxu0 }
 0x51e   : > { %v1558_v60 = vld [vmem:[%s2754_s7 + $0x18] sm:$0xff] }
 0x51f   : > { %v1030_v61 = vpop.f32.mrf.mxu0 }
 0x520   : > { %v1034_v62 = vmul.f32 0.35355338, %v1030_v61 }
 0x521   : > { %v1975_v63 = vpop.f32.mrf.mxu0 }
 0x522   : > { %v1035_v1 = vsel %vm473_vm3, %v1034_v62, -1e+30 }
 0x523   : > { %v1036_v2 = vsel %vm477_vm2, %v1035_v1, -inf }
 0x524   : > { %1037 = vmax.xlane.f32.xlu1 %v1036_v2  ;;  %v1467_v2 = vsub.s32 2, %v2538_v18 }
 0x535   : > { %1200 = vrot.lane.b32.xlu1 %v2522_v12, %s2305_s19 }
 0x539   : > { %1198 = vrot.lane.b32.xlu1 %v2522_v12, %s2306_s26 }
 0x5ad   : > { %v1038_v3 = vpop.xlane.xlu1 %1037 }
 0x5ae   : > { %v1039_v4 = vsub.f32 %v1035_v1, %v1038_v3  ;;  %v1462_v1 = vsub.s32 1, %v2538_v18 }
 0x5b0   : > { %v1040_v5 = vmul.f32 1.442695, %v1039_v4  ;;  %v1463_v3 = vrot.slane %v2630_v40, %v1462_v1 }
 0x5b1   : > { %v1201_v13 = vpop.permute.xlu1 %1200 }
 0x5b2   : > { %2129 = vpow2.f32 %v1040_v5 }
 0x5b5   : > { %v1199_v15 = vpop.permute.xlu1 %1198 }
 0x5bf   : > { %v2130_v6 = vpop.eup %2129 }
 0x5c0   : > { %v1042_v7 = vsel %vm477_vm2, %v2130_v6, 0.0 }
 0x5c1   : > { %1043 = vadd.xlane.f32.xlu0 %v1042_v7 }
 0x5d7   : > { %1047 = vrot.lane.b32.xlu0 %v2522_v12, %s2307_s27 }
 0x64a   : > { %v1044_v8 = vpop.xlane.xlu0 %1043 }
 0x64b   : > { %2131 = vrcp.f32 %v1044_v8 }
 0x64e   : > { %v1048_v10 = vpop.permute.xlu0 %1047 }
 0x64f   : > { %1977 = vmatpush3.msra.mxu1 %v1048_v10  ;;  %v1557_v10 = vld [vmem:[%s2754_s7 + $0x10] sm:$0xff] }
 0x650   : > { %1986 = vmatprep.subr.mxu1 %v2296_v0 }
 0x658   : > { %v2132_v11 = vpop.eup %2131 }
 0x659   : > { %v1046_v14 = vmul.f32 %v2132_v11, %v2130_v6  ;;  %v1468_v6 = vrot.slane %v2630_v40, %v1467_v2  ;;  %v1556_v11 = vld [vmem:[%s2754_s7 + $0x8] sm:$0xff] }
 0x65b   : > { %1979 = vmatmul.mubr.msk.f32.vlgmr.msra.gmra.mxu1 %vm477_vm2, %v1046_v14  ;;  %v1877_v14 = vld [vmem:[%s2751_s4] ss:$0 sm:$0xff] }
 0x65c   : > { %1987 = vmatpush3.xpose.msk.msra.mxu1 %vm477_vm2, %v1201_v13  ;;  %1988 = vmatprep.mubr.msk.f32.mxu1 %vm2297_vm0, %v2296_v0  ;;  %v1555_v13 = vld [vmem:[%s2754_s7] sm:$0xff] }
 0x65d   : > { %1996 = vmatprep.subr.mxu1 %v2296_v0 }
 0x65f   : > { %1989 = vmatmul.mubr.msk.f32.vlgmr.msra.gmra.mxu1 %vm477_vm2, %v1199_v15 }
 0x660   : > { %1998 = vmatprep.mubr.msk.f32.mxu1 %vm2297_vm0, %v2296_v0  ;;  %1997 = vmatpush3.msra.mxu1 %v1365_v19  ;;  %v2309_v19 = vmov 0  }
 0x661   : > { %2012 = vmatprep.subr.mxu1 %v2296_v0  ;;  %2119 = vset.pattern.permute.xlu1 %v2309_v19 }
 0x662   : > { %2120 = vset.pattern.permute.xlu0 %v2309_v19 }
 0x71b   : > { %v1119_v17 = vpop.f32.mrf.mxu1 }
 0x71c   : > { %1984 = vmatmul.mubr.msk.f32.vlgmr.msra.gmra.mxu0 %vm477_vm2, %v1119_v17 }
 0x71d   : > { %v1980_v20 = vpop.f32.mrf.mxu1  ;;  %1993 = vmatprep.mubr.msk.f32.mxu0 %vm2297_vm0, %v2296_v0 }
 0x71f   : > { %v1272_v21 = vpop.f32.mrf.mxu1 }
 0x720   : > { %v1276_v22 = vmul.f32 0.35355338, %v1272_v21  ;;  %v1565_v21 = vsub.s32 5, %v2538_v18 }
 0x721   : > { %v1990_v23 = vpop.f32.mrf.mxu1 }
 0x722   : > { %v1277_v24 = vsel %vm473_vm3, %v1276_v22, -1e+30  ;;  %v1566_v22 = vrot.slane %v2630_v40, %v1565_v21 }
 0x723   : > { %v1278_v25 = vsel %vm477_vm2, %v1277_v24, -inf }
 0x724   : > { %1279 = vmax.xlane.f32.xlu0 %v1278_v25 }
 0x73a   : > { %1289 = vrot.lane.b32.xlu0 %v2522_v12, %s2308_s22  ;;  %s373_s22 = scalar_lea.vmem [#allocation8], %s2479_s1 }
 0x73b   : > { %s1762_s8 = sshll.u32 %s373_s22, 4  ;;  %s1763_s8 = int_to_ptr.vmem [resolvable:$true] %s1762_s8 }
 0x73c   : > { %s2221_s17 = scalar_lea.vmem %s1763_s8, 16  ;;  %p2228_p4 = scmp.lt.s32.totalorder %s1763_s8, %s2226_s28 }
 0x73d   : > { %p2222_p13 = scmp.ne.s32.totalorder %s1763_s8, %s2221_s17  ;;  %p2229_p6 = scmp.lt.s32.totalorder %s2227_s14, %s2221_s17 }
 0x73f   : > { %p2223_p1 = pnand %p2222_p13, %p2779_p0  ;;  %p2230_p9 = por %p2229_p6, %p2228_p4 }
 0x741   : > { %p2224_p2 = pneg %p2223_p1 }
 0x743   : > { %p2231_p12 = pnand %p2230_p9, %p2224_p2 }
 0x7ad   : > { %v1280_v26 = vpop.xlane.xlu0 %1279 }
 0x7ae   : > { %v1281_v27 = vsub.f32 %v1277_v24, %v1280_v26 }
 0x7b0   : > { %v1282_v28 = vmul.f32 1.442695, %v1281_v27 }
 0x7b1   : > { %v1290_v29 = vpop.permute.xlu0 %1289 }
 0x7b2   : > { %2133 = vpow2.f32 %v1282_v28  ;;  %1992 = vmatpush3.msra.mxu0 %v1290_v29 }
 0x7b3   : > { %2001 = vmatprep.subr.mxu0 %v2296_v0 }
 0x7bf   : > { %v2134_v30 = vpop.eup %2133 }
 0x7c0   : > { %v1284_v31 = vsel %vm477_vm2, %v2134_v30, 0.0 }
 0x7c1   : > { %1285 = vadd.xlane.f32.xlu1 %v1284_v31 }
 0x7dc   : > { %v1193_v32 = vpop.f32.mrf.mxu0 }
 0x7dd   : > { %v1197_v12 = vadd.f32 %v1193_v32, %v2585_v59  ;;  %v1559_v59 = vld [vmem:[%s2754_s7 + $0x20] sm:$0xff] }
 0x7de   : > { %v1985_v33 = vpop.f32.mrf.mxu0 }
 0x84a   : > { %v1286_v34 = vpop.xlane.xlu1 %1285 }
 0x84b   : > { %2135 = vrcp.f32 %v1286_v34  ;;  %v1657_v34 = vsub.s32 3, %v2538_v18 }
 0x858   : > { %v2136_v35 = vpop.eup %2135 }
 0x859   : > { %v1288_v36 = vmul.f32 %v2136_v35, %v2134_v30  ;;  %v1662_v35 = vsub.s32 4, %v2538_v18 }
 0x85b   : > { %1994 = vmatmul.mubr.msk.f32.vlgmr.msra.gmra.mxu0 %vm477_vm2, %v1288_v36  ;;  %v1658_v36 = vrot.slane %v2630_v40, %v1657_v34  ;;  %v1663_v39 = vrot.slane %v2630_v40, %v1662_v35 }
 0x85c   : > { %2009 = vmatprep.mubr.msk.f32.mxu0 %vm2297_vm0, %v2296_v0  ;;  %2002 = vmatpush3.msra.mxu0 %v1473_v53 }
 0x85d   : > { %2003 = vmatprep.subr.mxu0 %v2296_v0 }
 0x85e   : > { %2004 = vmatpush3.msra.mxu0 %v1472_v54 }
 0x85f   : > { %2005 = vmatprep.subr.mxu0 %v2296_v0 }
 0x91b   : > { %v1361_v37 = vpop.f32.mrf.mxu0 }
 0x91c   : > { %1999 = vmatmul.mubr.msk.f32.vlgmr.msra.gmra.mxu1 %vm477_vm2, %v1361_v37 }
 0x91d   : > { %v1995_v38 = vpop.f32.mrf.mxu0  ;;  %2028 = vmatprep.mubr.msk.f32.mxu1 %vm2297_vm0, %v2296_v0  ;;  %2013 = vmatpush3.msra.mxu1 %v1562_v56 }
 0x91e   : > { %2014 = vmatprep.subr.mxu1 %v2296_v0 }
 0x91f   : > { %2015 = vmatpush3.msra.mxu1 %v1561_v57 }
 0x920   : > { %2016 = vmatprep.subr.mxu1 %v2296_v0 }
 0x921   : > { %2017 = vmatpush3.msra.mxu1 %v1560_v58 }
 0x922   : > { %2018 = vmatprep.subr.mxu1 %v2296_v0 }
 0x923   : > { %2019 = vmatpush3.msra.mxu1 %v1559_v59 }
 0x924   : > { %2020 = vmatprep.subr.mxu1 %v2296_v0 }
 0x925   : > { %2021 = vmatpush3.msra.mxu1 %v1558_v60 }
 0x926   : > { %2022 = vmatprep.subr.mxu1 %v2296_v0 }
 0x927   : > { %2023 = vmatpush3.msra.mxu1 %v1557_v10 }
 0x928   : > { %2024 = vmatprep.subr.mxu1 %v2296_v0 }
 0x929   : > { %2025 = vmatpush3.msra.mxu1 %v1556_v11 }
 0x92a   : > { %2026 = vmatprep.subr.mxu1 %v2296_v0 }
 0x92b   : > { %2027 = vmatpush3.msra.mxu1 %v1555_v13 }
 0x9dc   : > { %v1435_v42 = vpop.f32.mrf.mxu1 }
 0x9dd   : > { %v1439_v43 = vadd.f32 %v1435_v42, %v1197_v12 }
 0x9de   : > { %v2000_v44 = vpop.f32.mrf.mxu1 }
 0x9df   : > { %v1444_v45 = vadd.f32 %v1443_v41, %v1439_v43  ;;  %v1669_v43 = vrot.slane %v2630_v40, 6 }
 0x9e1   : > { %v1445_v46 = vadd.f32 %v1444_v45, %v2511_v9  ;;  %v1471_v9 = vld [vmem:[%s2753_s6 + $0x8] sm:$0xff] }
 0x9e2   : > { %2006 = vmatpush3.msra.mxu0 %v1471_v9 }
 0x9e3   : > { %v1446_v47 = vsel %vm395_vm1, %v1445_v46, 0.0  ;;  %2007 = vmatprep.subr.mxu0 %v2296_v0 }
 0x9e4   : > { %1447 = vadd.xlane.f32.xlu1 %v1446_v47  ;;  %2008 = vmatpush3.msra.mxu0 %v1470_v55 }
 0x9e5   : > { %2031 = vmatprep.subr.mxu0 %v2296_v0 }
 0xa6d   : > { %v1448_v48 = vpop.xlane.xlu1 %1447 }
 0xa6e   : > { %v1450_v49 = vmul.f32 0.03125, %v1448_v48 }
 0xa70   : > { %v1451_v50 = vsub.f32 %v1445_v46, %v1450_v49 }
 0xa72   : > { %v1452_v51 = vmul.f32 %v1451_v50, %v1451_v50 }
 0xa74   : > { %v1453_v52 = vsel %vm395_vm1, %v1452_v51, 0.0 }
 0xa75   : > { %1454 = vadd.xlane.f32.xlu1 %v1453_v52 }
 0xafe   : > { %v1455_v61 = vpop.xlane.xlu1 %1454 }
 0xaff   : > { %v1456_v62 = vmul.f32 0.03125, %v1455_v61 }
 0xb01   : > { %v1457_v63 = vadd.f32 1e-05, %v1456_v62 }
 0xb03   : > { %2137 = vrsqrt.f32 %v1457_v63 }
 0xb10   : > { %v2138_v4 = vpop.eup %2137 }
 0xb11   : > { %v1459_v5 = vmul.f32 %v2138_v4, %v1451_v50 }
 0xb13   : > { %v1464_v7 = vmul.f32 %v1463_v3, %v1459_v5 }
 0xb15   : > { %v1469_v8 = vadd.f32 %v1468_v6, %v1464_v7 }
 0xb17   : > { %2010 = vmatmul.mubr.msk.f32.vlgmr.msra.gmra.mxu0 %vm395_vm1, %v1469_v8 }
 0xb18   : > { %2033 = vmatprep.mubr.msk.f32.mxu0 %vm2297_vm0, %v2296_v0 }
 0xbd7   : > { %v1550_v15 = vpop.f32.mrf.mxu0 }
 0xbd8   : > { %v1551_v16 = vadd.f32 %v1877_v14, %v1550_v15 }
 0xbd9   : > { %v2011_v17 = vpop.f32.mrf.mxu0 }
 0xbda   : > { %v1554_v20 = vmax.f32 %v1551_v16, 0.0 }
 0xbdc   : > { %2029 = vmatmul.mubr.msk.f32.vlgmr.msra.gmra.mxu1 %vm1567_vm4, %v1554_v20 }
 0xc9c   : > { %v1637_v23 = vpop.f32.mrf.mxu1 }
 0xc9d   : > { %v1638_v24 = vadd.f32 %v1637_v23, %v1566_v22 }
 0xc9e   : > { %v2030_v25 = vpop.f32.mrf.mxu1 }
 0xc9f   : > { %v1641_v26 = vadd.f32 %v1638_v24, %v1469_v8 }
 0xca1   : > { %v1642_v0 = vsel %vm395_vm1, %v1641_v26, 0.0 }
 0xca2   : > { %1643 = vadd.xlane.f32.xlu1 %v1642_v0 }
 0xd2b   : > { %v1644_v27 = vpop.xlane.xlu1 %1643 }
 0xd2c   : > { %v1645_v28 = vmul.f32 0.03125, %v1644_v27 }
 0xd2e   : > { %v1646_v29 = vsub.f32 %v1641_v26, %v1645_v28 }
 0xd30   : > { %v1647_v30 = vmul.f32 %v1646_v29, %v1646_v29 }
 0xd32   : > { %v1648_v31 = vsel %vm395_vm1, %v1647_v30, 0.0 }
 0xd33   : > { %1649 = vadd.xlane.f32.xlu1 %v1648_v31 }
 0xd44   : > { %1667 = vperm.xlu1 %2119, %v2630_v40  }
 0xdbc   : > { %v1650_v32 = vpop.xlane.xlu1 %1649 }
 0xdbd   : > { %v1651_v12 = vmul.f32 0.03125, %v1650_v32 }
 0xdbf   : > { %v1652_v33 = vadd.f32 1e-05, %v1651_v12 }
 0xdc0   : > { %v1668_v44 = vpop.permute.xlu1 %1667 }
 0xdc1   : > { %2139 = vrsqrt.f32 %v1652_v33  ;;  %v1670_v45 = vrot.slane %v1668_v44, 7 }
 0xdce   : > { %v2140_v37 = vpop.eup %2139 }
 0xdcf   : > { %v1654_v38 = vmul.f32 %v2140_v37, %v1646_v29 }
 0xdd1   : > { %v1659_v41 = vmul.f32 %v1658_v36, %v1654_v38 }
 0xdd3   : > { %v1664_v42 = vadd.f32 %v1663_v39, %v1659_v41 }
 0xdd5   : > { %2032 = vmatpush3.xpose.msk.msra.mxu0 %vm395_vm1, %v1664_v42 }
 0xdd8   : > { %2034 = vmatmul.mubr.msk.f32.vlgmr.msra.gmra.mxu0 %vm395_vm1, %v1669_v43 }
 0xe98   : > { %v1743_v18 = vpop.f32.mrf.mxu0 }
 0xe99   : > { %v1744_v46 = vadd.f32 %v1743_v18, %v1670_v45 }
 0xe9a   : > { %v2035_v40 = vpop.f32.mrf.mxu0 }
 0xe9b   : > { %1748 = vst.msk [vmem:[%s373_s22] sm:$0x1] %vm1747_vm5, %v1744_v46 }
 0xe9c   : > { %2234 = shalt.err (!%p2231_p12)
}
 0xe9d   : > { %s2235_s20 = scalar_lea.hbm %s2710_s11, 16  ;;  %s2239_s26 = scalar_lea.hbm %s2756_s9, 32 }
 0xe9e   : > { %p2236_p3 = scmp.ne.s32.totalorder %s2710_s11, %s2235_s20  ;;  %p2240_p5 = scmp.lt.s32.totalorder %s2710_s11, %s2756_s9 }
 0xe9f   : > { %p2241_p8 = scmp.lt.s32.totalorder %s2239_s26, %s2235_s20 }
 0xea0   : > { %p2237_p7 = pnand %p2236_p3, %p2779_p0 }
 0xea1   : > { %p2242_p11 = por %p2241_p8, %p2240_p5 }
 0xea2   : > { %p2238_p10 = pneg %p2237_p7 }
 0xea4   : > { %p2243_p13 = pnand %p2242_p11, %p2238_p10 }
 0xea6   : > { %2246 = shalt.err (!%p2243_p13)
}
 0xea7   : > { %2046 = dma.vmem_to_hbm [thread:$0]  (%p2779_p0), %s1763_s8, 16, %s2710_s11, %s1750_s15  }
 0xea8 PF: > { %s1774_s29 = sand.u32 1, %s2277_s30   ;;  %p2780_p1 = scmp.ne.s32.totalorder %s2766_s16, 0 }
 0xea9   : > { %p2781_p2 = scmp.ge.s32.totalorder %s2289_s12, 2  ;;  %s1775_s22 = scalar_lea.sflag [#allocation4], %s1774_s29 }
 0xeab   : > { %p2060_p4 = pnand %p2781_p2, %p2780_p1 }
 0xead   : > { %p2061_p6 = pneg %p2060_p4 }
 0xeaf   : > { %2272 = dma.done.wait (%p2061_p6), %s1775_s22, 16  }
 0xeb0   : > { %2274 = vsyncadd (%p2061_p6), %s1775_s22, 4294967280  ;;  %s2782_s21 = sld [smem:[#allocation12_spill]]  ;;  %p23_p9 = scmp.ge.s32.totalorder %s2433_s18, 4  }
 0xeb1   : > { %s2783_s11 = sld [smem:[#allocation13_spill]]  ;;  %s2784_s30 = smov %s2281_s10 }
 0xeb2   : > { %s2786_s12 = smov %s2433_s18  ;;  %25 = sbr.rel (!%p23_p9) target bundleno = 9 (0x9), region = 109 }
 0xeb6   : > { %s2785_s10 = smov %s2782_s21 }
 0xeb7   :  { %1779 = vsyncpa [#allocation3], 1 }
 0xeb8   :  { %1781 = vsyncpa [#allocation3 + $0x1], 1 }
 0xeb9   :  { %1782 = vsyncpa [#allocation6], 1 }
 0xeba   :  { %1783 = vsyncpa [#allocation4], 1 }
 0xebb   :  { %1785 = vsyncpa [#allocation4 + $0x1], 1 }

</bundles_post_ra>
